<compile_context>
chip_gen: v7x
topology: tpu7x:2x2x1
jax: 0.10.0
libtpu: 0.0.40
codegen_flags: <defaults>
</compile_context>

<pallas_src>
import functools

import jax
import jax.numpy as jnp
from jax.experimental import pallas as pl
from jax.experimental.pallas import tpu as pltpu


def _round_up(x: int, m: int) -> int:
    return ((x + m - 1) // m) * m


def _cdiv(a: int, b: int) -> int:
    return -(-a // b)


def _pad_axis(a, axis, target):
    if a.shape[axis] == target:
        return a
    widths = [(0, 0)] * a.ndim
    widths[axis] = (0, target - a.shape[axis])
    return jnp.pad(a, widths)


def _value_fn_kernel(state_ref, w0_ref, b0_ref, *rest,
                     hidden_layers: int, skip_connection: bool, num_chunks: int):
    """Full layer chain (fused enc+fc -> hidden MLPs -> out head) for one tile."""
    mlp_refs = rest[:2 * hidden_layers]
    w_o1_ref, b_o1_ref, w_o2_ref, b_o2_ref, out_ref = rest[2 * hidden_layers:]

    tile_b = state_ref.shape[0]
    sub = tile_b // num_chunks

    # Static unroll over independent sub-chunks: lets the scheduler overlap one
    # chunk's bias/ReLU/cast epilogue with the other chunk's MXU pushes.
    for c in range(num_chunks):
        rows = slice(c * sub, (c + 1) * sub)

        # fused state_encoding + fc: Linear(state_dim, 2H) then ReLU.
        x = state_ref[rows, :].astype(w0_ref.dtype)            # in-kernel f32->bf16
        h = jnp.dot(x, w0_ref[...], preferred_element_type=jnp.float32) + b0_ref[...]
        h = jnp.maximum(h, 0.0).astype(jnp.bfloat16)            # ReLU fused w/ downcast

        # hidden MLPs: Linear(2H, 2H) (+ residual when enabled) then ReLU.
        for i in range(hidden_layers):
            y = (jnp.dot(h, mlp_refs[2 * i][...], preferred_element_type=jnp.float32)
                 + mlp_refs[2 * i + 1][...])
            if skip_connection and i > 0:
                y = y + h.astype(jnp.float32)                   # residual add in f32
            h = jnp.maximum(y, 0.0).astype(jnp.bfloat16)

        # out head part 1: Linear(2H, H) then ReLU (kept f32 for the VPU reduce).
        y = jnp.dot(h, w_o1_ref[...], preferred_element_type=jnp.float32) + b_o1_ref[...]
        h = jnp.maximum(y, 0.0)

        # out head part 2: the degenerate Linear(H, 1) as a VPU multiply + lane
        # reduce (keeps the MXU free); its scalar bias comes from SMEM.
        v = jnp.sum(h * w_o2_ref[...], axis=-1) + b_o2_ref[0]   # (sub,) lane-dense
        out_ref[0, rows] = v


def value_function_forward(state, params, *, hidden_layers: int = 1,
                           skip_connection: bool = False, tile_b_max: int = 1024):
    """ValueFunction forward. Returns shape (B,), matching the PyTorch module."""
    B, state_dim = state.shape
    H = params["w_enc"].shape[1]
    f32, bf16 = jnp.float32, jnp.bfloat16

    # --- batch tiling --------------------------------------------------------
    num_tiles = max(1, _cdiv(B, tile_b_max))
    if num_tiles == 1 and B >= 512:
        num_tiles = 2                          # >=2 grid steps -> both v7x TCs busy
    if num_tiles == 1:
        tile_b = _round_up(B, 8)               # (8,128) sublane rule on state block
    else:
        tile_b = _round_up(_cdiv(B, num_tiles), 128)   # lane-dense output blocks
        num_tiles = _cdiv(B, tile_b)
    b_pad = num_tiles * tile_b
    if b_pad != B:
        state = jnp.pad(state, ((0, b_pad - B), (0, 0)))   # zero rows, dropped below
    num_chunks = 2 if (tile_b % 256 == 0) else 1
    assert tile_b % num_chunks == 0

    # --- weight prep (once, wrapper side; MXU operands -> bf16) --------------
    Hp = _round_up(H, 128)
    H2p = _round_up(2 * H, 128)

    w_enc, b_enc = params["w_enc"].astype(f32), params["b_enc"].astype(f32)
    w_fc, b_fc = params["w_fc"].astype(f32), params["b_fc"].astype(f32)
    # No nonlinearity between state_encoding and fc -> fold the two Linears.
    w0 = _pad_axis(w_enc @ w_fc, 1, H2p).astype(bf16)           # (state_dim, 2Hp)
    b0 = _pad_axis(b_enc @ w_fc + b_fc, 1, H2p)                 # (1, 2Hp) f32

    vmem_weights = [w0, b0]
    for i in range(hidden_layers):
        w = _pad_axis(_pad_axis(params[f"w_m{i}"].astype(f32), 0, H2p), 1, H2p)
        vmem_weights += [w.astype(bf16),
                         _pad_axis(params[f"b_m{i}"].astype(f32), 1, H2p)]
    w_o1 = _pad_axis(_pad_axis(params["w_o1"].astype(f32), 0, H2p), 1, Hp)
    vmem_weights += [w_o1.astype(bf16),
                     _pad_axis(params["b_o1"].astype(f32), 1, Hp),
                     _pad_axis(params["w_o2"].astype(f32).reshape(1, H), 1, Hp)]
    b_o2 = params["b_o2"].astype(f32).reshape(1,)               # scalar, lives in SMEM

    kernel = functools.partial(_value_fn_kernel, hidden_layers=hidden_layers,
                               skip_connection=skip_connection, num_chunks=num_chunks)

    flops = 2 * b_pad * (state_dim * H2p + hidden_layers * H2p * H2p + H2p * Hp + Hp)
    weight_bytes = sum(int(w.size) * w.dtype.itemsize for w in vmem_weights)
    cost = pl.CostEstimate(flops=int(flops), transcendentals=0,
                           bytes_accessed=int(b_pad * state_dim * 4
                                              + weight_bytes + b_pad * 4))

    def build(single_buffer_weights: bool):
        # Constant-index weights don't need double buffering; Buffered(1) halves
        # their VMEM footprint (matters most on v7x's 64 MiB VMEM).
        spec_kwargs = ({"pipeline_mode": pl.Buffered(1)}
                       if single_buffer_weights else {})
        resident = lambda shape: pl.BlockSpec(shape, lambda i: (0, 0), **spec_kwargs)
        in_specs = ([pl.BlockSpec((tile_b, state_dim), lambda i: (i, 0))]
                    + [resident(tuple(w.shape)) for w in vmem_weights]
                    + [pl.BlockSpec(memory_space=pltpu.MemorySpace.SMEM)])
        out_spec = pl.BlockSpec((1, tile_b), lambda i: (0, i))   # lane-dense writeback

        bufs = 1 if single_buffer_weights else 2
        vmem_need = (weight_bytes * bufs               # resident weights/biases
                     + 2 * tile_b * state_dim * 4      # double-buffered state tile
                     + 2 * tile_b * 4                  # double-buffered output row
                     + 4 * (tile_b // num_chunks) * max(H2p, 2 * Hp) * 4)  # live acts
        vmem_limit = int(min(max(2 * vmem_need, 16 << 20), 56 << 20))

        return pl.pallas_call(
            kernel,
            out_shape=jax.ShapeDtypeStruct((1, b_pad), f32),
            grid=(num_tiles,),
            in_specs=in_specs,
            out_specs=out_spec,
            compiler_params=pltpu.CompilerParams(
                dimension_semantics=("parallel",),     # shard batch tiles over TCs
                vmem_limit_bytes=vmem_limit),
            cost_estimate=cost,
        )

    flat_inputs = [state] + vmem_weights + [b_o2]
    try:
        out = build(True)(*flat_inputs)
    except Exception:
        # pipeline_mode=pl.Buffered(1) not supported by this JAX/Mosaic build:
        # fall back to default double buffering (identical semantics).
        out = build(False)(*flat_inputs)

    return out[0, :B]                                   # drop padding + Squeeze(-1)


# ----------------------------------------------------------------------------
# Parameters + pure-JAX references + self-test
# ----------------------------------------------------------------------------
def init_params(key, state_dim: int, hidden_dim: int, hidden_layers: int):
    """Deterministic synthetic parameters (weights (in, out), biases (1, out))."""
    H = hidden_dim
    shapes = {
        "w_enc": (state_dim, H), "b_enc": (1, H),
        "w_fc": (H, 2 * H), "b_fc": (1, 2 * H),
        "w_o1": (2 * H, H), "b_o1": (1, H),
        "w_o2": (H, 1), "b_o2": (1, 1),
    }
    for i in range(hidden_layers):
        shapes[f"w_m{i}"] = (2 * H, 2 * H)
        shapes[f"b_m{i}"] = (1, 2 * H)
    params = {}
    names = sorted(shapes)
    keys = jax.random.split(key, len(names))
    for name, k in zip(names, keys):
        fan_in = shapes[name][0] if name.startswith("w") else shapes[name][1]
        scale = 1.0 / jnp.sqrt(jnp.float32(fan_in))
        params[name] = jax.random.uniform(k, shapes[name], jnp.float32,
                                          minval=-scale, maxval=scale)
    return params


def _reference_f32(state, params, hidden_layers, skip_connection):
    """Layer-by-layer f32 mirror of the PyTorch module."""
    h = state @ params["w_enc"] + params["b_enc"]
    h = jnp.maximum(h @ params["w_fc"] + params["b_fc"], 0.0)
    for i in range(hidden_layers):
        y = h @ params[f"w_m{i}"] + params[f"b_m{i}"]
        if skip_connection and i > 0:
            y = y + h
        h = jnp.maximum(y, 0.0)
    h = jnp.maximum(h @ params["w_o1"] + params["b_o1"], 0.0)
    return (h @ params["w_o2"] + params["b_o2"])[:, 0]


def _reference_kernel_math(state, params, hidden_layers, skip_connection):
    """Mirrors the kernel arithmetic (fused enc+fc, bf16 activations, f32 acc)."""
    bf16, f32 = jnp.bfloat16, jnp.float32
    w0 = params["w_enc"] @ params["w_fc"]
    b0 = params["b_enc"] @ params["w_fc"] + params["b_fc"]
    h = jnp.dot(state.astype(bf16), w0.astype(bf16), preferred_element_type=f32) + b0
    h = jnp.maximum(h, 0.0).astype(bf16)
    for i in range(hidden_layers):
        y = jnp.dot(h, params[f"w_m{i}"].astype(bf16),
                    preferred_element_type=f32) + params[f"b_m{i}"]
        if skip_connection and i > 0:
            y = y + h.astype(f32)
        h = jnp.maximum(y, 0.0).astype(bf16)
    y = jnp.dot(h, params["w_o1"].astype(bf16),
                preferred_element_type=f32) + params["b_o1"]
    h = jnp.maximum(y, 0.0)
    return (h @ params["w_o2"] + params["b_o2"])[:, 0]


def _check(B, state_dim, hidden, layers, skip, seed=0):
    key = jax.random.PRNGKey(seed)
    k_state, k_params = jax.random.split(key)
    state = jax.random.normal(k_state, (B, state_dim), jnp.float32)
    params = init_params(k_params, state_dim, hidden, layers)

    out = jax.block_until_ready(
        value_function_forward(state, params, hidden_layers=layers,
                               skip_connection=skip))
    assert out.shape == (B,), out.shape

    ref_k = _reference_kernel_math(state, params, layers, skip)
    ref_f = _reference_f32(state, params, layers, skip)
    assert jnp.allclose(out, ref_k, atol=1e-2, rtol=1e-2), (out, ref_k)
    assert jnp.allclose(out, ref_f, atol=5e-2, rtol=5e-2), (out, ref_f)


if __name__ == "__main__":
    # Module defaults (hidden_layers=1, skip=False) at small shapes.
    _check(B=8, state_dim=16, hidden=32, layers=1, skip=False)
    # Skip connections + a batch that needs sublane padding.
    _check(B=10, state_dim=16, hidden=32, layers=2, skip=True)
    # Multi-tile grid path (>=2 grid steps, 128-aligned tiles, batch padding).
    _check(B=600, state_dim=16, hidden=32, layers=1, skip=False)
    print("KERNEL_OK")
</pallas_src>

<mosaic_0001>
module attributes {stable_mosaic.version = 11 : i64} {
  func.func @_value_fn_kernel(%arg0: i32, %arg1: memref<8x16xf32, #tpu.memory_space<vmem>>, %arg2: memref<16x128xbf16, #tpu.memory_space<vmem>>, %arg3: memref<1x128xf32, #tpu.memory_space<vmem>>, %arg4: memref<128x128xbf16, #tpu.memory_space<vmem>>, %arg5: memref<1x128xf32, #tpu.memory_space<vmem>>, %arg6: memref<128x128xbf16, #tpu.memory_space<vmem>>, %arg7: memref<1x128xf32, #tpu.memory_space<vmem>>, %arg8: memref<1x128xf32, #tpu.memory_space<vmem>>, %arg9: memref<1xf32, #tpu.memory_space<smem>>, %arg10: memref<1x8xf32, #tpu.memory_space<vmem>>) attributes {dimension_semantics = [#tpu.dimension_semantics<parallel>], iteration_bounds = array<i64: 1>, scalar_prefetch = 0 : i64, scratch_operands = 0 : i64, tpu.core_type = #tpu.core_type<tc>, window_params = [{transform_indices = @transform_0, window_bounds = array<i64: 8, 16>}, {pipeline_mode = #tpu.pipeline_mode<synchronous>, transform_indices = @transform_1, window_bounds = array<i64: 16, 128>}, {pipeline_mode = #tpu.pipeline_mode<synchronous>, transform_indices = @transform_2, window_bounds = array<i64: 1, 128>}, {pipeline_mode = #tpu.pipeline_mode<synchronous>, transform_indices = @transform_3, window_bounds = array<i64: 128, 128>}, {pipeline_mode = #tpu.pipeline_mode<synchronous>, transform_indices = @transform_4, window_bounds = array<i64: 1, 128>}, {pipeline_mode = #tpu.pipeline_mode<synchronous>, transform_indices = @transform_5, window_bounds = array<i64: 128, 128>}, {pipeline_mode = #tpu.pipeline_mode<synchronous>, transform_indices = @transform_6, window_bounds = array<i64: 1, 128>}, {pipeline_mode = #tpu.pipeline_mode<synchronous>, transform_indices = @transform_7, window_bounds = array<i64: 1, 128>}, {transform_indices = @transform_8, window_bounds = array<i64: 1>}, {transform_indices = @transform_9, window_bounds = array<i64: 1, 8>}]} {
    %c0 = arith.constant 0 : index
    %c0_0 = arith.constant 0 : index
    %0 = vector.load %arg1[%c0, %c0_0] : memref<8x16xf32, #tpu.memory_space<vmem>>, vector<8x16xf32>
    %1 = arith.truncf %0 : vector<8x16xf32> to vector<8x16xbf16>
    %c0_1 = arith.constant 0 : index
    %c0_2 = arith.constant 0 : index
    %2 = vector.load %arg2[%c0_1, %c0_2] : memref<16x128xbf16, #tpu.memory_space<vmem>>, vector<16x128xbf16>
    %cst = arith.constant dense<0.000000e+00> : vector<8x128xf32>
    %3 = tpu.matmul %1, %2, %cst {dimension_numbers = #tpu.dot_dimension_numbers<[1], [0], [0], [1], [0, 0, 1, 1], [], []>} : vector<8x16xbf16>, vector<16x128xbf16>, vector<8x128xf32> -> vector<8x128xf32>
    %c0_3 = arith.constant 0 : index
    %c0_4 = arith.constant 0 : index
    %4 = vector.load %arg3[%c0_3, %c0_4] : memref<1x128xf32, #tpu.memory_space<vmem>>, vector<1x128xf32>
    %5 = vector.broadcast %4 : vector<1x128xf32> to vector<8x128xf32>
    %6 = arith.addf %3, %5 : vector<8x128xf32>
    %cst_5 = arith.constant 0.000000e+00 : f32
    %7 = vector.broadcast %cst_5 : f32 to vector<8x128xf32>
    %8 = arith.maximumf %6, %7 : vector<8x128xf32>
    %9 = arith.truncf %8 : vector<8x128xf32> to vector<8x128xbf16>
    %c0_6 = arith.constant 0 : index
    %c0_7 = arith.constant 0 : index
    %10 = vector.load %arg4[%c0_6, %c0_7] : memref<128x128xbf16, #tpu.memory_space<vmem>>, vector<128x128xbf16>
    %cst_8 = arith.constant dense<0.000000e+00> : vector<8x128xf32>
    %11 = tpu.matmul %9, %10, %cst_8 {dimension_numbers = #tpu.dot_dimension_numbers<[1], [0], [0], [1], [0, 0, 1, 1], [], []>} : vector<8x128xbf16>, vector<128x128xbf16>, vector<8x128xf32> -> vector<8x128xf32>
    %c0_9 = arith.constant 0 : index
    %c0_10 = arith.constant 0 : index
    %12 = vector.load %arg5[%c0_9, %c0_10] : memref<1x128xf32, #tpu.memory_space<vmem>>, vector<1x128xf32>
    %13 = vector.broadcast %12 : vector<1x128xf32> to vector<8x128xf32>
    %14 = arith.addf %11, %13 : vector<8x128xf32>
    %cst_11 = arith.constant 0.000000e+00 : f32
    %15 = vector.broadcast %cst_11 : f32 to vector<8x128xf32>
    %16 = arith.maximumf %14, %15 : vector<8x128xf32>
    %17 = arith.truncf %16 : vector<8x128xf32> to vector<8x128xbf16>
    %c0_12 = arith.constant 0 : index
    %c0_13 = arith.constant 0 : index
    %18 = vector.load %arg6[%c0_12, %c0_13] : memref<128x128xbf16, #tpu.memory_space<vmem>>, vector<128x128xbf16>
    %cst_14 = arith.constant dense<0.000000e+00> : vector<8x128xf32>
    %19 = tpu.matmul %17, %18, %cst_14 {dimension_numbers = #tpu.dot_dimension_numbers<[1], [0], [0], [1], [0, 0, 1, 1], [], []>} : vector<8x128xbf16>, vector<128x128xbf16>, vector<8x128xf32> -> vector<8x128xf32>
    %c0_15 = arith.constant 0 : index
    %c0_16 = arith.constant 0 : index
    %20 = vector.load %arg7[%c0_15, %c0_16] : memref<1x128xf32, #tpu.memory_space<vmem>>, vector<1x128xf32>
    %21 = vector.broadcast %20 : vector<1x128xf32> to vector<8x128xf32>
    %22 = arith.addf %19, %21 : vector<8x128xf32>
    %cst_17 = arith.constant 0.000000e+00 : f32
    %23 = vector.broadcast %cst_17 : f32 to vector<8x128xf32>
    %24 = arith.maximumf %22, %23 : vector<8x128xf32>
    %c0_18 = arith.constant 0 : index
    %c0_19 = arith.constant 0 : index
    %25 = vector.load %arg8[%c0_18, %c0_19] : memref<1x128xf32, #tpu.memory_space<vmem>>, vector<1x128xf32>
    %26 = vector.broadcast %25 : vector<1x128xf32> to vector<8x128xf32>
    %27 = arith.mulf %24, %26 : vector<8x128xf32>
    %cst_20 = arith.constant dense<0.000000e+00> : vector<8xf32>
    %28 = vector.multi_reduction <add>, %27, %cst_20 [1] : vector<8x128xf32> to vector<8xf32>
    %c0_21 = arith.constant 0 : index
    %29 = memref.load %arg9[%c0_21] : memref<1xf32, #tpu.memory_space<smem>>
    %30 = vector.broadcast %29 : f32 to vector<8xf32>
    %31 = arith.addf %28, %30 : vector<8xf32>
    %c0_22 = arith.constant 0 : index
    %c0_23 = arith.constant 0 : index
    %32 = vector.load %arg10[%c0_22, %c0_23] : memref<1x8xf32, #tpu.memory_space<vmem>>, vector<1x8xf32>
    %33 = vector.shape_cast %32 : vector<1x8xf32> to vector<8xf32>
    %34 = vector.shape_cast %31 : vector<8xf32> to vector<1x8xf32>
    tpu.vector_store %arg10[%c0_22, %c0_23], %34 {strides = array<i32>} : memref<1x8xf32, #tpu.memory_space<vmem>>, vector<1x8xf32>,
    return
  }
  func.func @transform_0(%arg0: i32) -> (i32, i32) {
    %c0_i32 = arith.constant 0 : i32
    %c0_i32_0 = arith.constant 0 : i32
    return %arg0, %c0_i32 : i32, i32
  }
  func.func @transform_1(%arg0: i32) -> (i32, i32) {
    %c0_i32 = arith.constant 0 : i32
    %c0_i32_0 = arith.constant 0 : i32
    %c0_i32_1 = arith.constant 0 : i32
    return %c0_i32, %c0_i32_0 : i32, i32
  }
  func.func @transform_2(%arg0: i32) -> (i32, i32) {
    %c0_i32 = arith.constant 0 : i32
    %c0_i32_0 = arith.constant 0 : i32
    %c0_i32_1 = arith.constant 0 : i32
    return %c0_i32, %c0_i32_0 : i32, i32
  }
  func.func @transform_3(%arg0: i32) -> (i32, i32) {
    %c0_i32 = arith.constant 0 : i32
    %c0_i32_0 = arith.constant 0 : i32
    %c0_i32_1 = arith.constant 0 : i32
    return %c0_i32, %c0_i32_0 : i32, i32
  }
  func.func @transform_4(%arg0: i32) -> (i32, i32) {
    %c0_i32 = arith.constant 0 : i32
    %c0_i32_0 = arith.constant 0 : i32
    %c0_i32_1 = arith.constant 0 : i32
    return %c0_i32, %c0_i32_0 : i32, i32
  }
  func.func @transform_5(%arg0: i32) -> (i32, i32) {
    %c0_i32 = arith.constant 0 : i32
    %c0_i32_0 = arith.constant 0 : i32
    %c0_i32_1 = arith.constant 0 : i32
    return %c0_i32, %c0_i32_0 : i32, i32
  }
  func.func @transform_6(%arg0: i32) -> (i32, i32) {
    %c0_i32 = arith.constant 0 : i32
    %c0_i32_0 = arith.constant 0 : i32
    %c0_i32_1 = arith.constant 0 : i32
    return %c0_i32, %c0_i32_0 : i32, i32
  }
  func.func @transform_7(%arg0: i32) -> (i32, i32) {
    %c0_i32 = arith.constant 0 : i32
    %c0_i32_0 = arith.constant 0 : i32
    %c0_i32_1 = arith.constant 0 : i32
    return %c0_i32, %c0_i32_0 : i32, i32
  }
  func.func @transform_8(%arg0: i32) -> i32 {
    %c0_i32 = arith.constant 0 : i32
    %c0_i32_0 = arith.constant 0 : i32
    return %c0_i32 : i32
  }
  func.func @transform_9(%arg0: i32) -> (i32, i32) {
    %c0_i32 = arith.constant 0 : i32
    %c0_i32_0 = arith.constant 0 : i32
    return %c0_i32, %arg0 : i32, i32
  }
}

module attributes {stable_mosaic.version = 11 : i64} {
  func.func @_value_fn_kernel(%arg0: i32, %arg1: memref<8x16xf32, #tpu.memory_space<vmem>>, %arg2: memref<16x128xbf16, #tpu.memory_space<vmem>>, %arg3: memref<1x128xf32, #tpu.memory_space<vmem>>, %arg4: memref<128x128xbf16, #tpu.memory_space<vmem>>, %arg5: memref<1x128xf32, #tpu.memory_space<vmem>>, %arg6: memref<128x128xbf16, #tpu.memory_space<vmem>>, %arg7: memref<1x128xf32, #tpu.memory_space<vmem>>, %arg8: memref<1x128xf32, #tpu.memory_space<vmem>>, %arg9: memref<1xf32, #tpu.memory_space<smem>>, %arg10: memref<1x8xf32, #tpu.memory_space<vmem>>) attributes {dimension_semantics = [#tpu.dimension_semantics<parallel>], iteration_bounds = array<i64: 1>, scalar_prefetch = 0 : i64, scratch_operands = 0 : i64, tpu.core_type = #tpu.core_type<tc>, window_params = [{transform_indices = @transform_0, window_bounds = array<i64: 8, 16>}, {pipeline_mode = #tpu.pipeline_mode<synchronous>, transform_indices = @transform_1, window_bounds = array<i64: 16, 128>}, {pipeline_mode = #tpu.pipeline_mode<synchronous>, transform_indices = @transform_2, window_bounds = array<i64: 1, 128>}, {pipeline_mode = #tpu.pipeline_mode<synchronous>, transform_indices = @transform_3, window_bounds = array<i64: 128, 128>}, {pipeline_mode = #tpu.pipeline_mode<synchronous>, transform_indices = @transform_4, window_bounds = array<i64: 1, 128>}, {pipeline_mode = #tpu.pipeline_mode<synchronous>, transform_indices = @transform_5, window_bounds = array<i64: 128, 128>}, {pipeline_mode = #tpu.pipeline_mode<synchronous>, transform_indices = @transform_6, window_bounds = array<i64: 1, 128>}, {pipeline_mode = #tpu.pipeline_mode<synchronous>, transform_indices = @transform_7, window_bounds = array<i64: 1, 128>}, {transform_indices = @transform_8, window_bounds = array<i64: 1>}, {transform_indices = @transform_9, window_bounds = array<i64: 1, 8>}]} {
    %c0 = arith.constant 0 : index
    %c0_0 = arith.constant 0 : index
    %0 = vector.load %arg1[%c0, %c0_0] : memref<8x16xf32, #tpu.memory_space<vmem>>, vector<8x16xf32>
    %1 = arith.truncf %0 : vector<8x16xf32> to vector<8x16xbf16>
    %c0_1 = arith.constant 0 : index
    %c0_2 = arith.constant 0 : index
    %2 = vector.load %arg2[%c0_1, %c0_2] : memref<16x128xbf16, #tpu.memory_space<vmem>>, vector<16x128xbf16>
    %cst = arith.constant dense<0.000000e+00> : vector<8x128xf32>
    %3 = tpu.matmul %1, %2, %cst {dimension_numbers = #tpu.dot_dimension_numbers<[1], [0], [0], [1], [0, 0, 1, 1], [], []>} : vector<8x16xbf16>, vector<16x128xbf16>, vector<8x128xf32> -> vector<8x128xf32>
    %c0_3 = arith.constant 0 : index
    %c0_4 = arith.constant 0 : index
    %4 = vector.load %arg3[%c0_3, %c0_4] : memref<1x128xf32, #tpu.memory_space<vmem>>, vector<1x128xf32>
    %5 = vector.broadcast %4 : vector<1x128xf32> to vector<8x128xf32>
    %6 = arith.addf %3, %5 : vector<8x128xf32>
    %cst_5 = arith.constant 0.000000e+00 : f32
    %7 = vector.broadcast %cst_5 : f32 to vector<8x128xf32>
    %8 = arith.maximumf %6, %7 : vector<8x128xf32>
    %9 = arith.truncf %8 : vector<8x128xf32> to vector<8x128xbf16>
    %c0_6 = arith.constant 0 : index
    %c0_7 = arith.constant 0 : index
    %10 = vector.load %arg4[%c0_6, %c0_7] : memref<128x128xbf16, #tpu.memory_space<vmem>>, vector<128x128xbf16>
    %cst_8 = arith.constant dense<0.000000e+00> : vector<8x128xf32>
    %11 = tpu.matmul %9, %10, %cst_8 {dimension_numbers = #tpu.dot_dimension_numbers<[1], [0], [0], [1], [0, 0, 1, 1], [], []>} : vector<8x128xbf16>, vector<128x128xbf16>, vector<8x128xf32> -> vector<8x128xf32>
    %c0_9 = arith.constant 0 : index
    %c0_10 = arith.constant 0 : index
    %12 = vector.load %arg5[%c0_9, %c0_10] : memref<1x128xf32, #tpu.memory_space<vmem>>, vector<1x128xf32>
    %13 = vector.broadcast %12 : vector<1x128xf32> to vector<8x128xf32>
    %14 = arith.addf %11, %13 : vector<8x128xf32>
    %cst_11 = arith.constant 0.000000e+00 : f32
    %15 = vector.broadcast %cst_11 : f32 to vector<8x128xf32>
    %16 = arith.maximumf %14, %15 : vector<8x128xf32>
    %17 = arith.truncf %16 : vector<8x128xf32> to vector<8x128xbf16>
    %c0_12 = arith.constant 0 : index
    %c0_13 = arith.constant 0 : index
    %18 = vector.load %arg6[%c0_12, %c0_13] : memref<128x128xbf16, #tpu.memory_space<vmem>>, vector<128x128xbf16>
    %cst_14 = arith.constant dense<0.000000e+00> : vector<8x128xf32>
    %19 = tpu.matmul %17, %18, %cst_14 {dimension_numbers = #tpu.dot_dimension_numbers<[1], [0], [0], [1], [0, 0, 1, 1], [], []>} : vector<8x128xbf16>, vector<128x128xbf16>, vector<8x128xf32> -> vector<8x128xf32>
    %c0_15 = arith.constant 0 : index
    %c0_16 = arith.constant 0 : index
    %20 = vector.load %arg7[%c0_15, %c0_16] : memref<1x128xf32, #tpu.memory_space<vmem>>, vector<1x128xf32>
    %21 = vector.broadcast %20 : vector<1x128xf32> to vector<8x128xf32>
    %22 = arith.addf %19, %21 : vector<8x128xf32>
    %cst_17 = arith.constant 0.000000e+00 : f32
    %23 = vector.broadcast %cst_17 : f32 to vector<8x128xf32>
    %24 = arith.maximumf %22, %23 : vector<8x128xf32>
    %c0_18 = arith.constant 0 : index
    %c0_19 = arith.constant 0 : index
    %25 = vector.load %arg8[%c0_18, %c0_19] : memref<1x128xf32, #tpu.memory_space<vmem>>, vector<1x128xf32>
    %26 = vector.broadcast %25 : vector<1x128xf32> to vector<8x128xf32>
    %27 = arith.mulf %24, %26 : vector<8x128xf32>
    %cst_20 = arith.constant dense<0.000000e+00> : vector<8xf32>
    %28 = vector.multi_reduction <add>, %27, %cst_20 [1] : vector<8x128xf32> to vector<8xf32>
    %c0_21 = arith.constant 0 : index
    %29 = memref.load %arg9[%c0_21] : memref<1xf32, #tpu.memory_space<smem>>
    %30 = vector.broadcast %29 : f32 to vector<8xf32>
    %31 = arith.addf %28, %30 : vector<8xf32>
    %c0_22 = arith.constant 0 : index
    %c0_23 = arith.constant 0 : index
    %32 = vector.load %arg10[%c0_22, %c0_23] : memref<1x8xf32, #tpu.memory_space<vmem>>, vector<1x8xf32>
    %33 = vector.shape_cast %32 : vector<1x8xf32> to vector<8xf32>
    %34 = vector.shape_cast %31 : vector<8xf32> to vector<1x8xf32>
    tpu.vector_store %arg10[%c0_22, %c0_23], %34 {strides = array<i32>} : memref<1x8xf32, #tpu.memory_space<vmem>>, vector<1x8xf32>,
    return
  }
  func.func @transform_0(%arg0: i32) -> (i32, i32) {
    %c0_i32 = arith.constant 0 : i32
    %c0_i32_0 = arith.constant 0 : i32
    return %arg0, %c0_i32 : i32, i32
  }
  func.func @transform_1(%arg0: i32) -> (i32, i32) {
    %c0_i32 = arith.constant 0 : i32
    %c0_i32_0 = arith.constant 0 : i32
    %c0_i32_1 = arith.constant 0 : i32
    return %c0_i32, %c0_i32_0 : i32, i32
  }
  func.func @transform_2(%arg0: i32) -> (i32, i32) {
    %c0_i32 = arith.constant 0 : i32
    %c0_i32_0 = arith.constant 0 : i32
    %c0_i32_1 = arith.constant 0 : i32
    return %c0_i32, %c0_i32_0 : i32, i32
  }
  func.func @transform_3(%arg0: i32) -> (i32, i32) {
    %c0_i32 = arith.constant 0 : i32
    %c0_i32_0 = arith.constant 0 : i32
    %c0_i32_1 = arith.constant 0 : i32
    return %c0_i32, %c0_i32_0 : i32, i32
  }
  func.func @transform_4(%arg0: i32) -> (i32, i32) {
    %c0_i32 = arith.constant 0 : i32
    %c0_i32_0 = arith.constant 0 : i32
    %c0_i32_1 = arith.constant 0 : i32
    return %c0_i32, %c0_i32_0 : i32, i32
  }
  func.func @transform_5(%arg0: i32) -> (i32, i32) {
    %c0_i32 = arith.constant 0 : i32
    %c0_i32_0 = arith.constant 0 : i32
    %c0_i32_1 = arith.constant 0 : i32
    return %c0_i32, %c0_i32_0 : i32, i32
  }
  func.func @transform_6(%arg0: i32) -> (i32, i32) {
    %c0_i32 = arith.constant 0 : i32
    %c0_i32_0 = arith.constant 0 : i32
    %c0_i32_1 = arith.constant 0 : i32
    return %c0_i32, %c0_i32_0 : i32, i32
  }
  func.func @transform_7(%arg0: i32) -> (i32, i32) {
    %c0_i32 = arith.constant 0 : i32
    %c0_i32_0 = arith.constant 0 : i32
    %c0_i32_1 = arith.constant 0 : i32
    return %c0_i32, %c0_i32_0 : i32, i32
  }
  func.func @transform_8(%arg0: i32) -> i32 {
    %c0_i32 = arith.constant 0 : i32
    %c0_i32_0 = arith.constant 0 : i32
    return %c0_i32 : i32
  }
  func.func @transform_9(%arg0: i32) -> (i32, i32) {
    %c0_i32 = arith.constant 0 : i32
    %c0_i32_0 = arith.constant 0 : i32
    return %c0_i32, %arg0 : i32, i32
  }
}

</mosaic_0001>

<bundles_post_ra>
// kernel: tpu_custom_call.1
= control target key start
LH: loop header
LB: loop body
LE: loop exit
PB: predicated region body
PF: predicated region fallthrough
CT: control target
= control target key end

     0   :  { %15 = vsyncpa [#allocation4], 0  ;;  %s811_s0 = inlined_call_operand.hbm [shape: f32[8,16], index: 0, kind: input, shape index: {}]   ;;  %s812_s1 = inlined_call_operand.hbm [shape: bf16[16,128], index: 1, kind: input, shape index: {}]   ;;  %s813_s2 = inlined_call_operand.vmem [shape: f32[1,128], index: 2, kind: input, shape index: {}]   ;;  %s814_s3 = inlined_call_operand.hbm [shape: bf16[128,128], index: 3, kind: input, shape index: {}]   ;;  %s815_s4 = inlined_call_operand.vmem [shape: f32[1,128], index: 4, kind: input, shape index: {}]   ;;  %s816_s5 = inlined_call_operand.hbm [shape: bf16[128,128], index: 5, kind: input, shape index: {}]   ;;  %s817_s6 = inlined_call_operand.vmem [shape: f32[1,128], index: 6, kind: input, shape index: {}]   ;;  %s818_s7 = inlined_call_operand.vmem [shape: f32[1,128], index: 7, kind: input, shape index: {}]   ;;  %s819_s8 = inlined_call_operand.<no memory space> [shape: f32[1], index: 8, kind: input, shape index: {}]   ;;  %s820_s9 = inlined_call_operand.hbm [shape: f32[1,8], index: 9, kind: output, shape index: {}]  }
   0x1   :  { %16 = vsyncpa [#allocation7], 0 }
   0x2   :  { %17 = vsyncpa [#allocation10], 0 }
   0x3   :  { %18 = vsyncpa [#allocation5], 0  ;;  %s648_s30 = smov [#allocation6]   ;;  %s530_s13 = scalar_lea.hbm %s812_s1, 128 }
   0x4   :  { %s34_s10 = sshll.u32 %s648_s30, 4  ;;  %p531_p0 = scmp.ne.s32.totalorder %s812_s1, %s530_s13  ;;  %s35_s10 = int_to_ptr.vmem [resolvable:$true] %s34_s10 }
   0x5   :  { %p534_p1 = scmp.lt.u32.totalorder %s530_s13, %s812_s1 }
   0x7   :  { %p536_p2 = pnand %p534_p1, %p531_p0 }
   0x9   :  { %539 = shalt.err (!%p536_p2)
}
   0xa   :  { %s540_s18 = scalar_lea.vmem %s35_s10, 128  ;;  %p545_p4 = scmp.lt.s32.totalorder %s35_s10, %s35_s10 }
   0xb   :  { %p541_p3 = scmp.ne.s32.totalorder %s35_s10, %s540_s18  ;;  %p546_p5 = scmp.lt.s32.totalorder %s540_s18, %s540_s18 }
   0xd   :  { %p547_p6 = por %p546_p5, %p545_p4 }
   0xf   :  { %p548_p7 = pnand %p547_p6, %p541_p3 }
  0x11   :  { %551 = shalt.err (!%p548_p7)
}
  0x12   :  { %s649_s19 = smov 64   ;;  %s650_s20 = smov 4  }
  0x13   :  { %40 = dma.hbm_to_vmem [thread:$0]  %s812_s1, 128, %s35_s10, [#allocation7], %s649_s19, %s649_s19, %s650_s20  }
  0x14   :  { %s651_s23 = smov [#allocation3]   ;;  %s652_s25 = smov [#allocation8]  }
  0x15   :  { %s25_s24 = sshll.u32 %s651_s23, 4  ;;  %s48_s26 = sshll.u32 %s652_s25, 4  ;;  %s26_s24 = int_to_ptr.vmem [resolvable:$true] %s25_s24  ;;  %s49_s26 = int_to_ptr.vmem [resolvable:$true] %s48_s26 }
  0x16   :  { %s552_s29 = scalar_lea.hbm %s811_s0, 128 }
  0x17   :  { %p553_p8 = scmp.ne.s32.totalorder %s811_s0, %s552_s29  ;;  %p556_p9 = scmp.lt.u32.totalorder %s552_s29, %s811_s0 }
  0x19   :  { %p558_p10 = pnand %p556_p9, %p553_p8 }
  0x1b   :  { %561 = shalt.err (!%p558_p10)
}
  0x1c   :  { %s562_s1 = scalar_lea.vmem %s26_s24, 128  ;;  %p567_p12 = scmp.lt.s32.totalorder %s26_s24, %s26_s24 }
  0x1d   :  { %p563_p11 = scmp.ne.s32.totalorder %s26_s24, %s562_s1  ;;  %p568_p13 = scmp.lt.s32.totalorder %s562_s1, %s562_s1 }
  0x1f   :  { %p569_p0 = por %p568_p13, %p567_p12 }
  0x21   :  { %p570_p1 = pnand %p569_p0, %p563_p11 }
  0x23   :  { %573 = shalt.err (!%p570_p1)
}
  0x24   :  { %28 = dma.hbm_to_vmem [thread:$0]  %s811_s0, 128, %s26_s24, [#allocation4]  }
  0x25   :  { %s574_s17 = scalar_lea.hbm %s814_s3, 1024 }
  0x26   :  { %p575_p2 = scmp.ne.s32.totalorder %s814_s3, %s574_s17  ;;  %p578_p3 = scmp.lt.u32.totalorder %s574_s17, %s814_s3 }
  0x28   :  { %p580_p4 = pnand %p578_p3, %p575_p2 }
  0x2a   :  { %583 = shalt.err (!%p580_p4)
}
  0x2b   :  { %s584_s25 = scalar_lea.vmem %s49_s26, 1024  ;;  %p589_p6 = scmp.lt.s32.totalorder %s49_s26, %s49_s26 }
  0x2c   :  { %p585_p5 = scmp.ne.s32.totalorder %s49_s26, %s584_s25  ;;  %p590_p7 = scmp.lt.s32.totalorder %s584_s25, %s584_s25 }
  0x2e   :  { %p591_p8 = por %p590_p7, %p589_p6 }
  0x30   :  { %p592_p9 = pnand %p591_p8, %p585_p5 }
  0x32   :  { %595 = shalt.err (!%p592_p9)
}
  0x33   :  { %54 = dma.hbm_to_vmem [thread:$0]  %s814_s3, 1024, %s49_s26, [#allocation7], %s649_s19, %s649_s19, %s650_s20  }
  0x34   :  { %s653_s27 = smov [#allocation9]   ;;  %s596_s11 = scalar_lea.hbm %s816_s5, 1024 }
  0x35   :  { %s62_s28 = sshll.u32 %s653_s27, 4  ;;  %p597_p10 = scmp.ne.s32.totalorder %s816_s5, %s596_s11  ;;  %s63_s28 = int_to_ptr.vmem [resolvable:$true] %s62_s28 }
  0x36   :  { %p600_p11 = scmp.lt.u32.totalorder %s596_s11, %s816_s5 }
  0x38   :  { %p602_p12 = pnand %p600_p11, %p597_p10 }
  0x3a   :  { %605 = shalt.err (!%p602_p12)
}
  0x3b   :  { %s606_s14 = scalar_lea.vmem %s63_s28, 1024  ;;  %p611_p0 = scmp.lt.s32.totalorder %s63_s28, %s63_s28 }
  0x3c   :  { %p607_p13 = scmp.ne.s32.totalorder %s63_s28, %s606_s14  ;;  %p612_p1 = scmp.lt.s32.totalorder %s606_s14, %s606_s14 }
  0x3e   :  { %p613_p2 = por %p612_p1, %p611_p0 }
  0x40   :  { %p614_p3 = pnand %p613_p2, %p607_p13 }
  0x42   :  { %617 = shalt.err (!%p614_p3)
}
  0x43   :  { %68 = dma.hbm_to_vmem [thread:$0]  %s816_s5, 1024, %s63_s28, [#allocation10], %s649_s19, %s649_s19, %s650_s20  }
  0x44   :  { %640 = dma.done.wait [#allocation4], 128  }
  0x45   :  { %641 = vsyncadd [#allocation4], 4294967168 }
  0x46   :  { %642 = dma.done.wait [#allocation7], 1152  }
  0x47   :  { %643 = vsyncadd [#allocation7], 4294966144 }
  0x48   :  { %644 = dma.done.wait [#allocation10], 1024  }
  0x49   :  { %645 = vsyncadd [#allocation10], 4294966272  ;;  %v654_v0 = vmov 0.0   ;;  %vm655_vm0 = vmmov 0   ;;  %v513_v1 = vld [vmem:[#allocation6] sm:$0xff]   ;;  %v88_v2 = vld [vmem:[#allocation3] sm:$0xff]  ;;  %v390_v45 = vlaneseq  ;;  %v387_v48 = vstv %s819_s8 }
  0x4a   :  { %458 = vmatprep.subr.bf16.mxu0 %v654_v0  ;;  %460 = vmatprep.mubr.msk.bf16.mxu0 %vm655_vm0, %v654_v0  ;;  %v89_v3 = vpack.c.bf16 %v88_v2, %v88_v2  ;;  %vm105_vm1 = vcmask 130048   ;;  %v514_v4 = vld [vmem:[#allocation8] sm:$0xff]   ;;  %v515_v5 = vld [vmem:[#allocation8 + $0x8] sm:$0xff]   ;;  %v516_v6 = vld [vmem:[#allocation8 + $0x10] sm:$0xff]   ;;  %vm397_vm2 = vcmask 57344  }
  0x4b   :  { %464 = vmatprep.subr.bf16.mxu1 %v654_v0  ;;  %480 = vmatprep.mubr.msk.bf16.mxu1 %vm655_vm0, %v654_v0  ;;  %v517_v7 = vld [vmem:[#allocation8 + $0x18] sm:$0xff]   ;;  %v518_v8 = vld [vmem:[#allocation8 + $0x20] sm:$0xff]   ;;  %v519_v9 = vld [vmem:[#allocation8 + $0x28] sm:$0xff]   ;;  %v391_v46 = vand.u32 127, %v390_v45  ;;  %v393_v47 = vshrl.u32 %v390_v45, 7 }
  0x4c   :  { %459 = vmatpush3.bf16.msra.mxu0 %v513_v1  ;;  %465 = vmatpush3.bf16.msra.mxu1 %v514_v4  ;;  %v520_v10 = vld [vmem:[#allocation8 + $0x30] sm:$0xff]   ;;  %v521_v11 = vld [vmem:[#allocation8 + $0x38] sm:$0xff]   ;;  %v522_v12 = vld [vmem:[#allocation9] sm:$0xff]  }
  0x4d   :  { %484 = vmatprep.subr.bf16.mxu0 %v654_v0  ;;  %466 = vmatprep.subr.bf16.mxu1 %v654_v0  ;;  %v523_v13 = vld [vmem:[#allocation9 + $0x8] sm:$0xff]   ;;  %v524_v14 = vld [vmem:[#allocation9 + $0x10] sm:$0xff]   ;;  %v525_v15 = vld [vmem:[#allocation9 + $0x18] sm:$0xff]   ;;  %v394_v49 = vsub.s32 %v391_v46, %v393_v47 }
  0x4e   :  { %v526_v16 = vld [vmem:[#allocation9 + $0x20] sm:$0xff]   ;;  %v527_v17 = vld [vmem:[#allocation9 + $0x28] sm:$0xff]   ;;  %v416_v18 = vld [vmem:[%s813_s2] ss:$0 sm:$0xff] }
  0x4f   :  { %461 = vmatmul.mubr.msk.bf16.vlgmr.msra.gmra.mrb[0].mxu0 %vm105_vm1, %v89_v3  ;;  %v528_v26 = vld [vmem:[#allocation9 + $0x30] sm:$0xff]   ;;  %v529_v27 = vld [vmem:[#allocation9 + $0x38] sm:$0xff]  }
  0x50   :  { %500 = vmatprep.mubr.msk.bf16.mxu0 %vm655_vm0, %v654_v0  ;;  %467 = vmatpush3.bf16.msra.mxu1 %v515_v5  ;;  %v419_v28 = vld [vmem:[%s815_s4] ss:$0 sm:$0xff] }
  0x51   :  { %468 = vmatprep.subr.bf16.mxu1 %v654_v0  ;;  %485 = vmatpush3.bf16.msra.mxu0 %v522_v12  ;;  %v428_v36 = vld [vmem:[%s817_s6] ss:$0 sm:$0xff]  ;;  %s656_s6 = smov [#allocation11]  }
  0x52   :  { %486 = vmatprep.subr.bf16.mxu0 %v654_v0  ;;  %v437_v41 = vld [vmem:[%s818_s7] ss:$0 sm:$0xff]  ;;  %s405_s22 = sshll.u32 %s656_s6, 4  ;;  %s406_s22 = int_to_ptr.vmem [resolvable:$true] %s405_s22 }
  0x53   :  { %s618_s7 = scalar_lea.vmem %s406_s22, 16  ;;  %s622_s23 = scalar_lea.vmem %s406_s22, 32 }
  0x54   :  { %469 = vmatpush3.bf16.msra.mxu1 %v516_v6  ;;  %p619_p4 = scmp.ne.s32.totalorder %s406_s22, %s618_s7  ;;  %p623_p5 = scmp.lt.s32.totalorder %s406_s22, %s406_s22 }
  0x55   :  { %470 = vmatprep.subr.bf16.mxu1 %v654_v0  ;;  %487 = vmatpush3.bf16.msra.mxu0 %v523_v13  ;;  %p624_p6 = scmp.lt.s32.totalorder %s622_s23, %s618_s7 }
  0x56   :  { %488 = vmatprep.subr.bf16.mxu0 %v654_v0 }
  0x57   :  { %p625_p7 = por %p624_p6, %p623_p5 }
  0x58   :  { %471 = vmatpush3.bf16.msra.mxu1 %v517_v7 }
  0x59   :  { %472 = vmatprep.subr.bf16.mxu1 %v654_v0  ;;  %489 = vmatpush3.bf16.msra.mxu0 %v524_v14  ;;  %p626_p8 = pnand %p625_p7, %p619_p4 }
  0x5a   :  { %490 = vmatprep.subr.bf16.mxu0 %v654_v0 }
  0x5c   :  { %473 = vmatpush3.bf16.msra.mxu1 %v518_v8 }
  0x5d   :  { %474 = vmatprep.subr.bf16.mxu1 %v654_v0  ;;  %491 = vmatpush3.bf16.msra.mxu0 %v525_v15 }
  0x5e   :  { %492 = vmatprep.subr.bf16.mxu0 %v654_v0 }
  0x60   :  { %475 = vmatpush3.bf16.msra.mxu1 %v519_v9 }
  0x61   :  { %476 = vmatprep.subr.bf16.mxu1 %v654_v0  ;;  %493 = vmatpush3.bf16.msra.mxu0 %v526_v16 }
  0x62   :  { %494 = vmatprep.subr.bf16.mxu0 %v654_v0 }
  0x64   :  { %477 = vmatpush3.bf16.msra.mxu1 %v520_v10 }
  0x65   :  { %478 = vmatprep.subr.bf16.mxu1 %v654_v0  ;;  %495 = vmatpush3.bf16.msra.mxu0 %v527_v17 }
  0x66   :  { %496 = vmatprep.subr.bf16.mxu0 %v654_v0 }
  0x68   :  { %479 = vmatpush3.bf16.msra.mxu1 %v521_v11 }
  0x69   :  { %497 = vmatpush3.bf16.msra.mxu0 %v528_v26 }
  0x6a   :  { %498 = vmatprep.subr.bf16.mxu0 %v654_v0 }
  0x6d   :  { %499 = vmatpush3.bf16.msra.mxu0 %v529_v27 }
 0x122   :  { %v143_v19 = vpop.f32.mrb[0].mxu0 }
 0x123   :  { %v144_v20 = vadd.f32 %v416_v18, %v143_v19  ;;  %v462_v21 = vpop.f32.mrb[1].mxu0 }
 0x124   :  { %v146_v22 = vpop.f32.mrb[2].mxu0 }
 0x125   :  { %v149_v23 = vmax.f32 %v144_v20, 0.0  ;;  %v463_v24 = vpop.f32.mrb[3].mxu0 }
 0x127   :  { %v150_v25 = vpack.c.bf16 %v149_v23, %v149_v23 }
 0x129   :  { %481 = vmatmul.mubr.bf16.vlgmr.msra.gmra.mrb[0].mxu1 %v150_v25 }
 0x1fc   :  { %v256_v29 = vpop.f32.mrb[0].mxu1 }
 0x1fd   :  { %v257_v30 = vadd.f32 %v419_v28, %v256_v29  ;;  %v482_v31 = vpop.f32.mrb[1].mxu1 }
 0x1fe   :  { %v259_v32 = vpop.f32.mrb[2].mxu1 }
 0x1ff   :  { %v262_v33 = vmax.f32 %v257_v30, 0.0  ;;  %v483_v34 = vpop.f32.mrb[3].mxu1 }
 0x201   :  { %v263_v35 = vpack.c.bf16 %v262_v33, %v262_v33 }
 0x203   :  { %501 = vmatmul.mubr.bf16.vlgmr.msra.gmra.mrb[4].mxu0 %v263_v35 }
 0x2d6   :  { %v369_v37 = vpop.f32.mrb[4].mxu0 }
 0x2d7   :  { %v370_v38 = vadd.f32 %v428_v36, %v369_v37  ;;  %v502_v39 = vpop.f32.mrb[5].mxu0 }
 0x2d8   :  { %v372_v40 = vpop.f32.mrb[6].mxu0 }
 0x2d9   :  { %v375_v42 = vmax.f32 %v370_v38, 0.0  ;;  %v503_v43 = vpop.f32.mrb[7].mxu0 }
 0x2db   :  { %v383_v44 = vmul.f32 %v437_v41, %v375_v42 }
 0x2dd   :  { %384 = vadd.xlane.f32.xlu0 %v383_v44 }
 0x36a   :  { %v385_v50 = vpop.xlane.xlu0 %384 }
 0x36b   :  { %v388_v51 = vadd.f32 %v387_v48, %v385_v50 }
 0x36d   :  { %v395_v52 = vrot.slane %v388_v51, %v394_v49 }
 0x36f   :  { %398 = vst.msk [vmem:[#allocation11] sm:$0x1] %vm397_vm2, %v395_v52 }
 0x370   :  { %629 = shalt.err (!%p626_p8)
}
 0x371   :  { %s630_s8 = scalar_lea.hbm %s820_s9, 16 }
 0x372   :  { %p631_p9 = scmp.ne.s32.totalorder %s820_s9, %s630_s8  ;;  %p634_p10 = scmp.lt.u32.totalorder %s630_s8, %s820_s9 }
 0x374   :  { %p636_p11 = pnand %p634_p10, %p631_p9 }
 0x376   :  { %639 = shalt.err (!%p636_p11)
}
 0x377   :  { %408 = dma.vmem_to_hbm [thread:$0]  %s406_s22, 16, %s820_s9, [#allocation5]  }
 0x378   :  { %646 = dma.done.wait [#allocation5], 16  }
 0x379   :  { %647 = vsyncadd [#allocation5], 4294967280 }
 0x37a   :  { %412 = vsyncpa [#allocation4], 1 }
 0x37b   :  { %413 = vsyncpa [#allocation7], 1 }
 0x37c   :  { %414 = vsyncpa [#allocation10], 1 }
 0x37d   :  { %415 = vsyncpa [#allocation5], 1 }

// kernel: tpu_custom_call.1
= control target key start
LH: loop header
LB: loop body
LE: loop exit
PB: predicated region body
PF: predicated region fallthrough
CT: control target
= control target key end

     0   :  { %15 = vsyncpa [#allocation4], 0  ;;  %s811_s0 = inlined_call_operand.hbm [shape: f32[8,16], index: 0, kind: input, shape index: {}]   ;;  %s812_s1 = inlined_call_operand.hbm [shape: bf16[16,128], index: 1, kind: input, shape index: {}]   ;;  %s813_s2 = inlined_call_operand.vmem [shape: f32[1,128], index: 2, kind: input, shape index: {}]   ;;  %s814_s3 = inlined_call_operand.hbm [shape: bf16[128,128], index: 3, kind: input, shape index: {}]   ;;  %s815_s4 = inlined_call_operand.vmem [shape: f32[1,128], index: 4, kind: input, shape index: {}]   ;;  %s816_s5 = inlined_call_operand.hbm [shape: bf16[128,128], index: 5, kind: input, shape index: {}]   ;;  %s817_s6 = inlined_call_operand.vmem [shape: f32[1,128], index: 6, kind: input, shape index: {}]   ;;  %s818_s7 = inlined_call_operand.vmem [shape: f32[1,128], index: 7, kind: input, shape index: {}]   ;;  %s819_s8 = inlined_call_operand.<no memory space> [shape: f32[1], index: 8, kind: input, shape index: {}]   ;;  %s820_s9 = inlined_call_operand.hbm [shape: f32[1,8], index: 9, kind: output, shape index: {}]  }
   0x1   :  { %16 = vsyncpa [#allocation7], 0 }
   0x2   :  { %17 = vsyncpa [#allocation10], 0 }
   0x3   :  { %18 = vsyncpa [#allocation5], 0  ;;  %s648_s30 = smov [#allocation6]   ;;  %s530_s13 = scalar_lea.hbm %s812_s1, 128 }
   0x4   :  { %s34_s10 = sshll.u32 %s648_s30, 4  ;;  %p531_p0 = scmp.ne.s32.totalorder %s812_s1, %s530_s13  ;;  %s35_s10 = int_to_ptr.vmem [resolvable:$true] %s34_s10 }
   0x5   :  { %p534_p1 = scmp.lt.u32.totalorder %s530_s13, %s812_s1 }
   0x7   :  { %p536_p2 = pnand %p534_p1, %p531_p0 }
   0x9   :  { %539 = shalt.err (!%p536_p2)
}
   0xa   :  { %s540_s18 = scalar_lea.vmem %s35_s10, 128  ;;  %p545_p4 = scmp.lt.s32.totalorder %s35_s10, %s35_s10 }
   0xb   :  { %p541_p3 = scmp.ne.s32.totalorder %s35_s10, %s540_s18  ;;  %p546_p5 = scmp.lt.s32.totalorder %s540_s18, %s540_s18 }
   0xd   :  { %p547_p6 = por %p546_p5, %p545_p4 }
   0xf   :  { %p548_p7 = pnand %p547_p6, %p541_p3 }
  0x11   :  { %551 = shalt.err (!%p548_p7)
}
  0x12   :  { %s649_s19 = smov 64   ;;  %s650_s20 = smov 4  }
  0x13   :  { %40 = dma.hbm_to_vmem [thread:$0]  %s812_s1, 128, %s35_s10, [#allocation7], %s649_s19, %s649_s19, %s650_s20  }
  0x14   :  { %s651_s23 = smov [#allocation3]   ;;  %s652_s25 = smov [#allocation8]  }
  0x15   :  { %s25_s24 = sshll.u32 %s651_s23, 4  ;;  %s48_s26 = sshll.u32 %s652_s25, 4  ;;  %s26_s24 = int_to_ptr.vmem [resolvable:$true] %s25_s24  ;;  %s49_s26 = int_to_ptr.vmem [resolvable:$true] %s48_s26 }
  0x16   :  { %s552_s29 = scalar_lea.hbm %s811_s0, 128 }
  0x17   :  { %p553_p8 = scmp.ne.s32.totalorder %s811_s0, %s552_s29  ;;  %p556_p9 = scmp.lt.u32.totalorder %s552_s29, %s811_s0 }
  0x19   :  { %p558_p10 = pnand %p556_p9, %p553_p8 }
  0x1b   :  { %561 = shalt.err (!%p558_p10)
}
  0x1c   :  { %s562_s1 = scalar_lea.vmem %s26_s24, 128  ;;  %p567_p12 = scmp.lt.s32.totalorder %s26_s24, %s26_s24 }
  0x1d   :  { %p563_p11 = scmp.ne.s32.totalorder %s26_s24, %s562_s1  ;;  %p568_p13 = scmp.lt.s32.totalorder %s562_s1, %s562_s1 }
  0x1f   :  { %p569_p0 = por %p568_p13, %p567_p12 }
  0x21   :  { %p570_p1 = pnand %p569_p0, %p563_p11 }
  0x23   :  { %573 = shalt.err (!%p570_p1)
}
  0x24   :  { %28 = dma.hbm_to_vmem [thread:$0]  %s811_s0, 128, %s26_s24, [#allocation4]  }
  0x25   :  { %s574_s17 = scalar_lea.hbm %s814_s3, 1024 }
  0x26   :  { %p575_p2 = scmp.ne.s32.totalorder %s814_s3, %s574_s17  ;;  %p578_p3 = scmp.lt.u32.totalorder %s574_s17, %s814_s3 }
  0x28   :  { %p580_p4 = pnand %p578_p3, %p575_p2 }
  0x2a   :  { %583 = shalt.err (!%p580_p4)
}
  0x2b   :  { %s584_s25 = scalar_lea.vmem %s49_s26, 1024  ;;  %p589_p6 = scmp.lt.s32.totalorder %s49_s26, %s49_s26 }
  0x2c   :  { %p585_p5 = scmp.ne.s32.totalorder %s49_s26, %s584_s25  ;;  %p590_p7 = scmp.lt.s32.totalorder %s584_s25, %s584_s25 }
  0x2e   :  { %p591_p8 = por %p590_p7, %p589_p6 }
  0x30   :  { %p592_p9 = pnand %p591_p8, %p585_p5 }
  0x32   :  { %595 = shalt.err (!%p592_p9)
}
  0x33   :  { %54 = dma.hbm_to_vmem [thread:$0]  %s814_s3, 1024, %s49_s26, [#allocation7], %s649_s19, %s649_s19, %s650_s20  }
  0x34   :  { %s653_s27 = smov [#allocation9]   ;;  %s596_s11 = scalar_lea.hbm %s816_s5, 1024 }
  0x35   :  { %s62_s28 = sshll.u32 %s653_s27, 4  ;;  %p597_p10 = scmp.ne.s32.totalorder %s816_s5, %s596_s11  ;;  %s63_s28 = int_to_ptr.vmem [resolvable:$true] %s62_s28 }
  0x36   :  { %p600_p11 = scmp.lt.u32.totalorder %s596_s11, %s816_s5 }
  0x38   :  { %p602_p12 = pnand %p600_p11, %p597_p10 }
  0x3a   :  { %605 = shalt.err (!%p602_p12)
}
  0x3b   :  { %s606_s14 = scalar_lea.vmem %s63_s28, 1024  ;;  %p611_p0 = scmp.lt.s32.totalorder %s63_s28, %s63_s28 }
  0x3c   :  { %p607_p13 = scmp.ne.s32.totalorder %s63_s28, %s606_s14  ;;  %p612_p1 = scmp.lt.s32.totalorder %s606_s14, %s606_s14 }
  0x3e   :  { %p613_p2 = por %p612_p1, %p611_p0 }
  0x40   :  { %p614_p3 = pnand %p613_p2, %p607_p13 }
  0x42   :  { %617 = shalt.err (!%p614_p3)
}
  0x43   :  { %68 = dma.hbm_to_vmem [thread:$0]  %s816_s5, 1024, %s63_s28, [#allocation10], %s649_s19, %s649_s19, %s650_s20  }
  0x44   :  { %640 = dma.done.wait [#allocation4], 128  }
  0x45   :  { %641 = vsyncadd [#allocation4], 4294967168 }
  0x46   :  { %642 = dma.done.wait [#allocation7], 1152  }
  0x47   :  { %643 = vsyncadd [#allocation7], 4294966144 }
  0x48   :  { %644 = dma.done.wait [#allocation10], 1024  }
  0x49   :  { %645 = vsyncadd [#allocation10], 4294966272  ;;  %v654_v0 = vmov 0.0   ;;  %vm655_vm0 = vmmov 0   ;;  %v513_v1 = vld [vmem:[#allocation6] sm:$0xff]   ;;  %v88_v2 = vld [vmem:[#allocation3] sm:$0xff]  ;;  %v390_v45 = vlaneseq  ;;  %v387_v48 = vstv %s819_s8 }
  0x4a   :  { %458 = vmatprep.subr.bf16.mxu0 %v654_v0  ;;  %460 = vmatprep.mubr.msk.bf16.mxu0 %vm655_vm0, %v654_v0  ;;  %v89_v3 = vpack.c.bf16 %v88_v2, %v88_v2  ;;  %vm105_vm1 = vcmask 130048   ;;  %v514_v4 = vld [vmem:[#allocation8] sm:$0xff]   ;;  %v515_v5 = vld [vmem:[#allocation8 + $0x8] sm:$0xff]   ;;  %v516_v6 = vld [vmem:[#allocation8 + $0x10] sm:$0xff]   ;;  %vm397_vm2 = vcmask 57344  }
  0x4b   :  { %464 = vmatprep.subr.bf16.mxu1 %v654_v0  ;;  %480 = vmatprep.mubr.msk.bf16.mxu1 %vm655_vm0, %v654_v0  ;;  %v517_v7 = vld [vmem:[#allocation8 + $0x18] sm:$0xff]   ;;  %v518_v8 = vld [vmem:[#allocation8 + $0x20] sm:$0xff]   ;;  %v519_v9 = vld [vmem:[#allocation8 + $0x28] sm:$0xff]   ;;  %v391_v46 = vand.u32 127, %v390_v45  ;;  %v393_v47 = vshrl.u32 %v390_v45, 7 }
  0x4c   :  { %459 = vmatpush3.bf16.msra.mxu0 %v513_v1  ;;  %465 = vmatpush3.bf16.msra.mxu1 %v514_v4  ;;  %v520_v10 = vld [vmem:[#allocation8 + $0x30] sm:$0xff]   ;;  %v521_v11 = vld [vmem:[#allocation8 + $0x38] sm:$0xff]   ;;  %v522_v12 = vld [vmem:[#allocation9] sm:$0xff]  }
  0x4d   :  { %484 = vmatprep.subr.bf16.mxu0 %v654_v0  ;;  %466 = vmatprep.subr.bf16.mxu1 %v654_v0  ;;  %v523_v13 = vld [vmem:[#allocation9 + $0x8] sm:$0xff]   ;;  %v524_v14 = vld [vmem:[#allocation9 + $0x10] sm:$0xff]   ;;  %v525_v15 = vld [vmem:[#allocation9 + $0x18] sm:$0xff]   ;;  %v394_v49 = vsub.s32 %v391_v46, %v393_v47 }
  0x4e   :  { %v526_v16 = vld [vmem:[#allocation9 + $0x20] sm:$0xff]   ;;  %v527_v17 = vld [vmem:[#allocation9 + $0x28] sm:$0xff]   ;;  %v416_v18 = vld [vmem:[%s813_s2] ss:$0 sm:$0xff] }
  0x4f   :  { %461 = vmatmul.mubr.msk.bf16.vlgmr.msra.gmra.mrb[0].mxu0 %vm105_vm1, %v89_v3  ;;  %v528_v26 = vld [vmem:[#allocation9 + $0x30] sm:$0xff]   ;;  %v529_v27 = vld [vmem:[#allocation9 + $0x38] sm:$0xff]  }
  0x50   :  { %500 = vmatprep.mubr.msk.bf16.mxu0 %vm655_vm0, %v654_v0  ;;  %467 = vmatpush3.bf16.msra.mxu1 %v515_v5  ;;  %v419_v28 = vld [vmem:[%s815_s4] ss:$0 sm:$0xff] }
  0x51   :  { %468 = vmatprep.subr.bf16.mxu1 %v654_v0  ;;  %485 = vmatpush3.bf16.msra.mxu0 %v522_v12  ;;  %v428_v36 = vld [vmem:[%s817_s6] ss:$0 sm:$0xff]  ;;  %s656_s6 = smov [#allocation11]  }
  0x52   :  { %486 = vmatprep.subr.bf16.mxu0 %v654_v0  ;;  %v437_v41 = vld [vmem:[%s818_s7] ss:$0 sm:$0xff]  ;;  %s405_s22 = sshll.u32 %s656_s6, 4  ;;  %s406_s22 = int_to_ptr.vmem [resolvable:$true] %s405_s22 }
  0x53   :  { %s618_s7 = scalar_lea.vmem %s406_s22, 16  ;;  %s622_s23 = scalar_lea.vmem %s406_s22, 32 }
  0x54   :  { %469 = vmatpush3.bf16.msra.mxu1 %v516_v6  ;;  %p619_p4 = scmp.ne.s32.totalorder %s406_s22, %s618_s7  ;;  %p623_p5 = scmp.lt.s32.totalorder %s406_s22, %s406_s22 }
  0x55   :  { %470 = vmatprep.subr.bf16.mxu1 %v654_v0  ;;  %487 = vmatpush3.bf16.msra.mxu0 %v523_v13  ;;  %p624_p6 = scmp.lt.s32.totalorder %s622_s23, %s618_s7 }
  0x56   :  { %488 = vmatprep.subr.bf16.mxu0 %v654_v0 }
  0x57   :  { %p625_p7 = por %p624_p6, %p623_p5 }
  0x58   :  { %471 = vmatpush3.bf16.msra.mxu1 %v517_v7 }
  0x59   :  { %472 = vmatprep.subr.bf16.mxu1 %v654_v0  ;;  %489 = vmatpush3.bf16.msra.mxu0 %v524_v14  ;;  %p626_p8 = pnand %p625_p7, %p619_p4 }
  0x5a   :  { %490 = vmatprep.subr.bf16.mxu0 %v654_v0 }
  0x5c   :  { %473 = vmatpush3.bf16.msra.mxu1 %v518_v8 }
  0x5d   :  { %474 = vmatprep.subr.bf16.mxu1 %v654_v0  ;;  %491 = vmatpush3.bf16.msra.mxu0 %v525_v15 }
  0x5e   :  { %492 = vmatprep.subr.bf16.mxu0 %v654_v0 }
  0x60   :  { %475 = vmatpush3.bf16.msra.mxu1 %v519_v9 }
  0x61   :  { %476 = vmatprep.subr.bf16.mxu1 %v654_v0  ;;  %493 = vmatpush3.bf16.msra.mxu0 %v526_v16 }
  0x62   :  { %494 = vmatprep.subr.bf16.mxu0 %v654_v0 }
  0x64   :  { %477 = vmatpush3.bf16.msra.mxu1 %v520_v10 }
  0x65   :  { %478 = vmatprep.subr.bf16.mxu1 %v654_v0  ;;  %495 = vmatpush3.bf16.msra.mxu0 %v527_v17 }
  0x66   :  { %496 = vmatprep.subr.bf16.mxu0 %v654_v0 }
  0x68   :  { %479 = vmatpush3.bf16.msra.mxu1 %v521_v11 }
  0x69   :  { %497 = vmatpush3.bf16.msra.mxu0 %v528_v26 }
  0x6a   :  { %498 = vmatprep.subr.bf16.mxu0 %v654_v0 }
  0x6d   :  { %499 = vmatpush3.bf16.msra.mxu0 %v529_v27 }
 0x122   :  { %v143_v19 = vpop.f32.mrb[0].mxu0 }
 0x123   :  { %v144_v20 = vadd.f32 %v416_v18, %v143_v19  ;;  %v462_v21 = vpop.f32.mrb[1].mxu0 }
 0x124   :  { %v146_v22 = vpop.f32.mrb[2].mxu0 }
 0x125   :  { %v149_v23 = vmax.f32 %v144_v20, 0.0  ;;  %v463_v24 = vpop.f32.mrb[3].mxu0 }
 0x127   :  { %v150_v25 = vpack.c.bf16 %v149_v23, %v149_v23 }
 0x129   :  { %481 = vmatmul.mubr.bf16.vlgmr.msra.gmra.mrb[0].mxu1 %v150_v25 }
 0x1fc   :  { %v256_v29 = vpop.f32.mrb[0].mxu1 }
 0x1fd   :  { %v257_v30 = vadd.f32 %v419_v28, %v256_v29  ;;  %v482_v31 = vpop.f32.mrb[1].mxu1 }
 0x1fe   :  { %v259_v32 = vpop.f32.mrb[2].mxu1 }
 0x1ff   :  { %v262_v33 = vmax.f32 %v257_v30, 0.0  ;;  %v483_v34 = vpop.f32.mrb[3].mxu1 }
 0x201   :  { %v263_v35 = vpack.c.bf16 %v262_v33, %v262_v33 }
 0x203   :  { %501 = vmatmul.mubr.bf16.vlgmr.msra.gmra.mrb[4].mxu0 %v263_v35 }
 0x2d6   :  { %v369_v37 = vpop.f32.mrb[4].mxu0 }
 0x2d7   :  { %v370_v38 = vadd.f32 %v428_v36, %v369_v37  ;;  %v502_v39 = vpop.f32.mrb[5].mxu0 }
 0x2d8   :  { %v372_v40 = vpop.f32.mrb[6].mxu0 }
 0x2d9   :  { %v375_v42 = vmax.f32 %v370_v38, 0.0  ;;  %v503_v43 = vpop.f32.mrb[7].mxu0 }
 0x2db   :  { %v383_v44 = vmul.f32 %v437_v41, %v375_v42 }
 0x2dd   :  { %384 = vadd.xlane.f32.xlu0 %v383_v44 }
 0x36a   :  { %v385_v50 = vpop.xlane.xlu0 %384 }
 0x36b   :  { %v388_v51 = vadd.f32 %v387_v48, %v385_v50 }
 0x36d   :  { %v395_v52 = vrot.slane %v388_v51, %v394_v49 }
 0x36f   :  { %398 = vst.msk [vmem:[#allocation11] sm:$0x1] %vm397_vm2, %v395_v52 }
 0x370   :  { %629 = shalt.err (!%p626_p8)
}
 0x371   :  { %s630_s8 = scalar_lea.hbm %s820_s9, 16 }
 0x372   :  { %p631_p9 = scmp.ne.s32.totalorder %s820_s9, %s630_s8  ;;  %p634_p10 = scmp.lt.u32.totalorder %s630_s8, %s820_s9 }
 0x374   :  { %p636_p11 = pnand %p634_p10, %p631_p9 }
 0x376   :  { %639 = shalt.err (!%p636_p11)
}
 0x377   :  { %408 = dma.vmem_to_hbm [thread:$0]  %s406_s22, 16, %s820_s9, [#allocation5]  }
 0x378   :  { %646 = dma.done.wait [#allocation5], 16  }
 0x379   :  { %647 = vsyncadd [#allocation5], 4294967280 }
 0x37a   :  { %412 = vsyncpa [#allocation4], 1 }
 0x37b   :  { %413 = vsyncpa [#allocation7], 1 }
 0x37c   :  { %414 = vsyncpa [#allocation10], 1 }
 0x37d   :  { %415 = vsyncpa [#allocation5], 1 }

</bundles_post_ra>
